<compile_context>
chip_gen: v6e
topology: v6e:2x2x1
jax: 0.10.0
libtpu: 0.0.40
codegen_flags: <defaults>
</compile_context>

<pallas_src>
import math

import jax
import jax.numpy as jnp
from jax.experimental import pallas as pl
from jax.experimental.pallas import tpu as pltpu

LANE = 128   # TPU lane width; also hidden1 width and padded hidden2 width
HID1 = 128
HID2 = 64


# ----------------------------- Pallas kernel ------------------------------- #
def _rainbow_dqn_kernel(x_ref, w1_ref, b1_ref, w2_ref, b2_ref, wq_ref, bq_ref,
                        q_ref):
    cdt = w1_ref.dtype   # MXU compute dtype (bf16), f32 accumulation throughout

    # layer 1: Linear(input_dim, 128) + ReLU  (input already packed & bf16)
    h1 = jnp.dot(x_ref[...], w1_ref[...], preferred_element_type=jnp.float32)
    h1 = jnp.maximum(h1 + b1_ref[...], 0.0)                     # (TB, 128) f32

    # layer 2: Linear(128, 64) padded to 128 lanes (zero cols -> ReLU 0) + ReLU
    h2 = jnp.dot(h1.astype(cdt), w2_ref[...], preferred_element_type=jnp.float32)
    h2 = jnp.maximum(h2 + b2_ref[...], 0.0)                     # (TB, 128) f32

    # dueling head: value/advantage/mean-subtraction folded into wq/bq host-side,
    # so the epilogue is a plain matmul + bias (no VALU/XLU combine work).
    q = jnp.dot(h2.astype(cdt), wq_ref[...], preferred_element_type=jnp.float32)
    q_ref[...] = q + bq_ref[...]                                # (TB, A) f32


# --------------------------- parameter handling ----------------------------- #
def _round_up(x, m):
    return (x + m - 1) // m * m


def _xavier_uniform(key, fan_in, fan_out):
    # matches nn.init.xavier_uniform_ (gain=1); stored as (in, out) = W_pt.T
    bound = math.sqrt(6.0 / (fan_in + fan_out))
    return jax.random.uniform(key, (fan_in, fan_out), jnp.float32, -bound, bound)


def init_params(key, input_dim, output_dim):
    """PyTorch-equivalent logical parameters (weights stored (in, out) = W_pt.T)."""
    k1, k2, k3, k4 = jax.random.split(key, 4)
    return {
        "w1": _xavier_uniform(k1, input_dim, HID1), "b1": jnp.zeros((HID1,), jnp.float32),
        "w2": _xavier_uniform(k2, HID1, HID2), "b2": jnp.zeros((HID2,), jnp.float32),
        "wa": _xavier_uniform(k3, HID2, output_dim), "ba": jnp.zeros((output_dim,), jnp.float32),
        "wv": _xavier_uniform(k4, HID2, 1), "bv": jnp.zeros((1,), jnp.float32),
    }


def pack_params(params, input_dim, output_dim, compute_dtype=jnp.bfloat16):
    """Pad / fuse the logical params into the MXU-friendly kernel layout."""
    a = output_dim
    in_pad = _round_up(input_dim, 8)     # sublane-multiple K for layer 1

    # layer 1: rows padded (the padded input columns are zero, so exact).
    w1 = jnp.zeros((in_pad, HID1), jnp.float32).at[:input_dim, :].set(params["w1"])
    b1 = params["b1"].reshape(1, HID1)

    # layer 2: hidden2 64 -> 128 lane padding with zero columns (ReLU(0)=0).
    w2 = jnp.zeros((HID1, LANE), jnp.float32).at[:, :HID2].set(params["w2"])
    b2 = jnp.zeros((1, LANE), jnp.float32).at[0, :HID2].set(params["b2"])

    # dueling head folded in f32 then cast:
    #   q = val + adv - mean(adv)  <=>  wq = wa - mean_j(wa) + wv,
    #                                   bq = ba - mean(ba) + bv
    wq64 = params["wa"] - jnp.mean(params["wa"], axis=1, keepdims=True) + params["wv"]
    bq = (params["ba"] - jnp.mean(params["ba"]) + params["bv"][0]).reshape(1, a)
    wq = jnp.zeros((LANE, a), jnp.float32).at[:HID2, :].set(wq64)

    return {
        "w1": w1.astype(compute_dtype), "b1": b1.astype(jnp.float32),
        "w2": w2.astype(compute_dtype), "b2": b2.astype(jnp.float32),
        "wq": wq.astype(compute_dtype), "bq": bq.astype(jnp.float32),
    }


# ------------------------------ forward glue -------------------------------- #
def rainbow_dqn_forward(states, packed, output_dim, *, block_b=1024):
    """states: 5-tuple of (B, k_i) f32 arrays in concat order. Returns (B, A) f32."""
    b = states[0].shape[0]
    in_pad = packed["w1"].shape[0]
    cdt = packed["w1"].dtype

    # Pack the 5 components into one (B, in_pad) bf16 array (XLA fuses this;
    # bf16 input halves HBM read traffic and matches the MXU compute dtype).
    combined = jnp.concatenate(states, axis=1)
    d_in = combined.shape[1]
    if d_in < in_pad:
        combined = jnp.pad(combined, ((0, 0), (0, in_pad - d_in)))
    x = combined.astype(cdt)

    # Batch tile: big tiles amortize the ~0.35 us per-grid-step overhead and keep
    # DMAs long; per-step footprint at tb=1024 is ~1 MB, far below every
    # generation's scoped VMEM.  Keep >=2 grid steps at larger batches so the
    # "parallel" batch axis can be sharded across v7x's two TensorCores.
    half = _round_up(max(-(-b // 2), 1), 8)
    tb = max(8, min(block_b, half))
    b_pad = _round_up(b, tb)
    if b_pad != b:
        x = jnp.pad(x, ((0, b_pad - b), (0, 0)))
    grid = (b_pad // tb,)

    weights = (packed["w1"], packed["b1"], packed["w2"], packed["b2"],
               packed["wq"], packed["bq"])
    in_specs = ([pl.BlockSpec((tb, in_pad), lambda i: (i, 0))]
                + [pl.BlockSpec(w.shape, lambda i: (0, 0)) for w in weights])
    # Narrow output: A equals the full last dim, so the block shape is legal and
    # HBM writeback is 16x smaller than a 128-lane f32 slab.
    out_spec = pl.BlockSpec((tb, output_dim), lambda i: (i, 0))

    flops = 2 * b_pad * (in_pad * HID1 + HID1 * LANE + LANE * output_dim)
    bytes_accessed = int(x.size * x.dtype.itemsize
                         + sum(w.size * w.dtype.itemsize for w in weights)
                         + b_pad * output_dim * 4)

    q_pad = pl.pallas_call(
        _rainbow_dqn_kernel,
        out_shape=jax.ShapeDtypeStruct((b_pad, output_dim), jnp.float32),
        grid=grid,
        in_specs=in_specs,
        out_specs=out_spec,
        compiler_params=pltpu.CompilerParams(dimension_semantics=("parallel",)),
        cost_estimate=pl.CostEstimate(flops=flops, transcendentals=0,
                                      bytes_accessed=bytes_accessed),
    )(x, *weights)

    return q_pad[:b]


def simplified_rainbow_dqn(state_dict, packed, output_dim):
    """Mirrors SimplifiedRainbowDQN.forward (including its default tensors)."""
    location = state_dict["location"]
    status = state_dict["status"]
    rays = state_dict["rays"]
    # Defaults mirror the PyTorch forward exactly: zeros_like(location) and
    # zeros((B, 2)).
    relative_pos = state_dict.get("relative_pos", jnp.zeros_like(location))
    time_features = state_dict.get(
        "time_features", jnp.zeros((location.shape[0], 2), location.dtype))
    states = (location, status, rays, relative_pos, time_features)
    return rainbow_dqn_forward(states, packed, output_dim)


# ---------------------------------- main ------------------------------------ #
if __name__ == "__main__":
    B = 8
    LOC, STAT, RAYS, REL, TIME = 2, 4, 16, 2, 2
    input_dim = LOC + STAT + RAYS + REL + TIME   # 26
    output_dim = 8

    key = jax.random.PRNGKey(0)
    kp, kl, ks, kr, krel, kt = jax.random.split(key, 6)

    params = init_params(kp, input_dim, output_dim)
    packed = pack_params(params, input_dim, output_dim, compute_dtype=jnp.bfloat16)

    state_dict = {
        "location": jax.random.normal(kl, (B, LOC), jnp.float32),
        "status": jax.random.normal(ks, (B, STAT), jnp.float32),
        "rays": jax.random.normal(kr, (B, RAYS), jnp.float32),
        "relative_pos": jax.random.normal(krel, (B, REL), jnp.float32),
        "time_features": jax.random.normal(kt, (B, TIME), jnp.float32),
    }

    q = simplified_rainbow_dqn(state_dict, packed, output_dim)
    jax.block_until_ready(q)
    assert q.shape == (B, output_dim)

    states = (state_dict["location"], state_dict["status"], state_dict["rays"],
              state_dict["relative_pos"], state_dict["time_features"])

    # Check 1: mirror the kernel math exactly (packed bf16 inputs/weights with
    # the folded dueling head, f32 accumulation).
    cdt = packed["w1"].dtype
    combined = jnp.concatenate(states, axis=1)
    in_pad = packed["w1"].shape[0]
    x_m = jnp.pad(combined, ((0, 0), (0, in_pad - combined.shape[1]))).astype(cdt)
    h1 = jnp.maximum(jnp.dot(x_m, packed["w1"],
                             preferred_element_type=jnp.float32) + packed["b1"], 0.0)
    h2 = jnp.maximum(jnp.dot(h1.astype(cdt), packed["w2"],
                             preferred_element_type=jnp.float32) + packed["b2"], 0.0)
    q_mirror = jnp.dot(h2.astype(cdt), packed["wq"],
                       preferred_element_type=jnp.float32) + packed["bq"]
    assert jnp.allclose(q, q_mirror, atol=1e-3, rtol=1e-3), \
        float(jnp.max(jnp.abs(q - q_mirror)))

    # Check 2: pure-f32 reference of the original module semantics
    # (concat -> MLP -> dueling); loose tolerance absorbs the bf16 weights.
    h1f = jnp.maximum(combined @ params["w1"] + params["b1"], 0.0)
    h2f = jnp.maximum(h1f @ params["w2"] + params["b2"], 0.0)
    advf = h2f @ params["wa"] + params["ba"]
    valf = h2f @ params["wv"] + params["bv"]
    q_f32 = valf + advf - advf.mean(axis=1, keepdims=True)
    assert jnp.allclose(q, q_f32, atol=5e-2, rtol=5e-2), \
        float(jnp.max(jnp.abs(q - q_f32)))

    print("KERNEL_OK")
</pallas_src>

<mosaic_0001>
module attributes {stable_mosaic.version = 11 : i64} {
  func.func @_rainbow_dqn_kernel(%arg0: i32, %arg1: memref<8x32xbf16, #tpu.memory_space<vmem>>, %arg2: memref<32x128xbf16, #tpu.memory_space<vmem>>, %arg3: memref<1x128xf32, #tpu.memory_space<vmem>>, %arg4: memref<128x128xbf16, #tpu.memory_space<vmem>>, %arg5: memref<1x128xf32, #tpu.memory_space<vmem>>, %arg6: memref<128x8xbf16, #tpu.memory_space<vmem>>, %arg7: memref<1x8xf32, #tpu.memory_space<vmem>>, %arg8: memref<8x8xf32, #tpu.memory_space<vmem>>) attributes {dimension_semantics = [#tpu.dimension_semantics<parallel>], iteration_bounds = array<i64: 1>, scalar_prefetch = 0 : i64, scratch_operands = 0 : i64, tpu.core_type = #tpu.core_type<tc>, window_params = [{transform_indices = @transform_0, window_bounds = array<i64: 8, 32>}, {pipeline_mode = #tpu.pipeline_mode<synchronous>, transform_indices = @transform_1, window_bounds = array<i64: 32, 128>}, {pipeline_mode = #tpu.pipeline_mode<synchronous>, transform_indices = @transform_2, window_bounds = array<i64: 1, 128>}, {pipeline_mode = #tpu.pipeline_mode<synchronous>, transform_indices = @transform_3, window_bounds = array<i64: 128, 128>}, {pipeline_mode = #tpu.pipeline_mode<synchronous>, transform_indices = @transform_4, window_bounds = array<i64: 1, 128>}, {pipeline_mode = #tpu.pipeline_mode<synchronous>, transform_indices = @transform_5, window_bounds = array<i64: 128, 8>}, {pipeline_mode = #tpu.pipeline_mode<synchronous>, transform_indices = @transform_6, window_bounds = array<i64: 1, 8>}, {transform_indices = @transform_7, window_bounds = array<i64: 8, 8>}]} {
    %c0 = arith.constant 0 : index
    %c0_0 = arith.constant 0 : index
    %0 = vector.load %arg1[%c0, %c0_0] : memref<8x32xbf16, #tpu.memory_space<vmem>>, vector<8x32xbf16>
    %c0_1 = arith.constant 0 : index
    %c0_2 = arith.constant 0 : index
    %1 = vector.load %arg2[%c0_1, %c0_2] : memref<32x128xbf16, #tpu.memory_space<vmem>>, vector<32x128xbf16>
    %cst = arith.constant dense<0.000000e+00> : vector<8x128xf32>
    %2 = tpu.matmul %0, %1, %cst {dimension_numbers = #tpu.dot_dimension_numbers<[1], [0], [0], [1], [0, 0, 1, 1], [], []>} : vector<8x32xbf16>, vector<32x128xbf16>, vector<8x128xf32> -> vector<8x128xf32>
    %c0_3 = arith.constant 0 : index
    %c0_4 = arith.constant 0 : index
    %3 = vector.load %arg3[%c0_3, %c0_4] : memref<1x128xf32, #tpu.memory_space<vmem>>, vector<1x128xf32>
    %4 = vector.broadcast %3 : vector<1x128xf32> to vector<8x128xf32>
    %5 = arith.addf %2, %4 : vector<8x128xf32>
    %cst_5 = arith.constant 0.000000e+00 : f32
    %6 = vector.broadcast %cst_5 : f32 to vector<8x128xf32>
    %7 = arith.maximumf %5, %6 : vector<8x128xf32>
    %8 = arith.truncf %7 : vector<8x128xf32> to vector<8x128xbf16>
    %c0_6 = arith.constant 0 : index
    %c0_7 = arith.constant 0 : index
    %9 = vector.load %arg4[%c0_6, %c0_7] : memref<128x128xbf16, #tpu.memory_space<vmem>>, vector<128x128xbf16>
    %cst_8 = arith.constant dense<0.000000e+00> : vector<8x128xf32>
    %10 = tpu.matmul %8, %9, %cst_8 {dimension_numbers = #tpu.dot_dimension_numbers<[1], [0], [0], [1], [0, 0, 1, 1], [], []>} : vector<8x128xbf16>, vector<128x128xbf16>, vector<8x128xf32> -> vector<8x128xf32>
    %c0_9 = arith.constant 0 : index
    %c0_10 = arith.constant 0 : index
    %11 = vector.load %arg5[%c0_9, %c0_10] : memref<1x128xf32, #tpu.memory_space<vmem>>, vector<1x128xf32>
    %12 = vector.broadcast %11 : vector<1x128xf32> to vector<8x128xf32>
    %13 = arith.addf %10, %12 : vector<8x128xf32>
    %cst_11 = arith.constant 0.000000e+00 : f32
    %14 = vector.broadcast %cst_11 : f32 to vector<8x128xf32>
    %15 = arith.maximumf %13, %14 : vector<8x128xf32>
    %16 = arith.truncf %15 : vector<8x128xf32> to vector<8x128xbf16>
    %c0_12 = arith.constant 0 : index
    %c0_13 = arith.constant 0 : index
    %17 = vector.load %arg6[%c0_12, %c0_13] : memref<128x8xbf16, #tpu.memory_space<vmem>>, vector<128x8xbf16>
    %cst_14 = arith.constant dense<0.000000e+00> : vector<8x8xf32>
    %18 = tpu.matmul %16, %17, %cst_14 {dimension_numbers = #tpu.dot_dimension_numbers<[1], [0], [0], [1], [0, 0, 1, 1], [], []>} : vector<8x128xbf16>, vector<128x8xbf16>, vector<8x8xf32> -> vector<8x8xf32>
    %c0_15 = arith.constant 0 : index
    %c0_16 = arith.constant 0 : index
    %19 = vector.load %arg7[%c0_15, %c0_16] : memref<1x8xf32, #tpu.memory_space<vmem>>, vector<1x8xf32>
    %20 = vector.broadcast %19 : vector<1x8xf32> to vector<8x8xf32>
    %21 = arith.addf %18, %20 : vector<8x8xf32>
    %c0_17 = arith.constant 0 : index
    %c0_18 = arith.constant 0 : index
    %22 = vector.load %arg8[%c0_17, %c0_18] : memref<8x8xf32, #tpu.memory_space<vmem>>, vector<8x8xf32>
    tpu.vector_store %arg8[%c0_17, %c0_18], %21 {strides = array<i32>} : memref<8x8xf32, #tpu.memory_space<vmem>>, vector<8x8xf32>,
    return
  }
  func.func @transform_0(%arg0: i32) -> (i32, i32) {
    %c0_i32 = arith.constant 0 : i32
    %c0_i32_0 = arith.constant 0 : i32
    return %arg0, %c0_i32 : i32, i32
  }
  func.func @transform_1(%arg0: i32) -> (i32, i32) {
    %c0_i32 = arith.constant 0 : i32
    %c0_i32_0 = arith.constant 0 : i32
    %c0_i32_1 = arith.constant 0 : i32
    return %c0_i32, %c0_i32_0 : i32, i32
  }
  func.func @transform_2(%arg0: i32) -> (i32, i32) {
    %c0_i32 = arith.constant 0 : i32
    %c0_i32_0 = arith.constant 0 : i32
    %c0_i32_1 = arith.constant 0 : i32
    return %c0_i32, %c0_i32_0 : i32, i32
  }
  func.func @transform_3(%arg0: i32) -> (i32, i32) {
    %c0_i32 = arith.constant 0 : i32
    %c0_i32_0 = arith.constant 0 : i32
    %c0_i32_1 = arith.constant 0 : i32
    return %c0_i32, %c0_i32_0 : i32, i32
  }
  func.func @transform_4(%arg0: i32) -> (i32, i32) {
    %c0_i32 = arith.constant 0 : i32
    %c0_i32_0 = arith.constant 0 : i32
    %c0_i32_1 = arith.constant 0 : i32
    return %c0_i32, %c0_i32_0 : i32, i32
  }
  func.func @transform_5(%arg0: i32) -> (i32, i32) {
    %c0_i32 = arith.constant 0 : i32
    %c0_i32_0 = arith.constant 0 : i32
    %c0_i32_1 = arith.constant 0 : i32
    return %c0_i32, %c0_i32_0 : i32, i32
  }
  func.func @transform_6(%arg0: i32) -> (i32, i32) {
    %c0_i32 = arith.constant 0 : i32
    %c0_i32_0 = arith.constant 0 : i32
    %c0_i32_1 = arith.constant 0 : i32
    return %c0_i32, %c0_i32_0 : i32, i32
  }
  func.func @transform_7(%arg0: i32) -> (i32, i32) {
    %c0_i32 = arith.constant 0 : i32
    %c0_i32_0 = arith.constant 0 : i32
    return %arg0, %c0_i32 : i32, i32
  }
}

</mosaic_0001>

<bundles_post_ra>
// kernel: tpu_custom_call.1
= control target key start
LH: loop header
LB: loop body
LE: loop exit
PB: predicated region body
PF: predicated region fallthrough
CT: control target
= control target key end

     0   :  { %12 = vsyncpa [#allocation3], 0  ;;  %s648_s0 = inlined_call_operand.vmem [shape: bf16[8,32], index: 0, kind: input, shape index: {}]   ;;  %s649_s1 = inlined_call_operand.hbm [shape: bf16[32,128], index: 1, kind: input, shape index: {}]   ;;  %s650_s2 = inlined_call_operand.vmem [shape: f32[1,128], index: 2, kind: input, shape index: {}]   ;;  %s651_s3 = inlined_call_operand.vmem [shape: bf16[128,128], index: 3, kind: input, shape index: {}]   ;;  %s652_s4 = inlined_call_operand.vmem [shape: f32[1,128], index: 4, kind: input, shape index: {}]   ;;  %s653_s5 = inlined_call_operand.vmem [shape: bf16[128,8], index: 5, kind: input, shape index: {}]   ;;  %s654_s6 = inlined_call_operand.vmem [shape: f32[1,8], index: 6, kind: input, shape index: {}]   ;;  %s655_s7 = inlined_call_operand.hbm [shape: f32[8,8], index: 7, kind: output, shape index: {}]  }
   0x1   :  { %13 = vsyncpa [#allocation4], 0  ;;  %s512_s24 = smov [#allocation2]  }
   0x2   :  { %s21_s25 = sshll.u32 %s512_s24, 4  ;;  %s22_s25 = int_to_ptr.vmem [resolvable:$true] %s21_s25 }
   0x3   :  { %s476_s26 = scalar_lea.vmem %s22_s25, 256  ;;  %p481_p1 = scmp.lt.s32.totalorder %s22_s25, %s22_s25 }
   0x4   :  { %p477_p0 = scmp.ne.s32.totalorder %s22_s25, %s476_s26  ;;  %p482_p2 = scmp.lt.s32.totalorder %s476_s26, %s476_s26 }
   0x6   :  { %p483_p3 = por %p482_p2, %p481_p1 }
   0x8   :  { %p484_p4 = pnand %p483_p3, %p477_p0 }
   0xa   :  { %487 = shalt.err (!%p484_p4)
}
   0xb   :  { %s513_s27 = smov 64   ;;  %s514_s28 = smov 4  }
   0xc   :  { %27 = dma.hbm_to_vmem [thread:$0]  %s649_s1, 256, %s22_s25, [#allocation3], %s513_s27, %s513_s27, %s514_s28  }
   0xd   :  { %508 = dma.done.wait [#allocation3], 256  }
   0xe   :  { %509 = vsyncadd [#allocation3], 4294967040  ;;  %v515_v0 = vmov 0.0   ;;  %vm516_vm0 = vmmov 0   ;;  %v450_v1 = vld [vmem:[#allocation2 + $0x8] sm:$0xff]   ;;  %v451_v2 = vld [vmem:[#allocation2] sm:$0xff]  }
   0xf   :  { %396 = vmatprep.subr.bf16.mxu0 %v515_v0  ;;  %400 = vmatprep.mubr.msk.bf16.mxu0 %vm516_vm0, %v515_v0  ;;  %v452_v3 = vld [vmem:[%s651_s3 + $0x38] sm:$0xff]   ;;  %vm66_vm1 = vcmask 261120   ;;  %v453_v4 = vld [vmem:[%s651_s3 + $0x30] sm:$0xff]   ;;  %v42_v5 = vld [vmem:[%s648_s0] sm:$0xf]  ;;  %s517_s19 = smov [#allocation5]  }
  0x10   :  { %404 = vmatprep.subr.bf16.mxu1 %v515_v0  ;;  %420 = vmatprep.mubr.msk.bf16.mxu1 %vm516_vm0, %v515_v0  ;;  %v454_v6 = vld [vmem:[%s651_s3 + $0x28] sm:$0xff]   ;;  %v455_v7 = vld [vmem:[%s651_s3 + $0x20] sm:$0xff]   ;;  %v456_v8 = vld [vmem:[%s651_s3 + $0x18] sm:$0xff]   ;;  %s344_s20 = sshll.u32 %s517_s19, 4  ;;  %vm336_vm2 = vcmask 64512   ;;  %s345_s20 = int_to_ptr.vmem [resolvable:$true] %s344_s20 }
  0x11   :  { %397 = vmatpush3.bf16.msra.mxu0 %v450_v1  ;;  %405 = vmatpush3.bf16.msra.mxu1 %v452_v3  ;;  %v457_v9 = vld [vmem:[%s651_s3 + $0x10] sm:$0xff]   ;;  %v458_v10 = vld [vmem:[%s651_s3 + $0x8] sm:$0xff]   ;;  %v459_v11 = vld [vmem:[%s651_s3] sm:$0xff]   ;;  %p493_p6 = scmp.lt.s32.totalorder %s345_s20, %s345_s20 }
  0x12   :  { %398 = vmatprep.subr.bf16.mxu0 %v515_v0  ;;  %406 = vmatprep.subr.bf16.mxu1 %v515_v0  ;;  %v460_v12 = vld [vmem:[%s653_s5 + $0x38] sm:$0xff]   ;;  %v461_v13 = vld [vmem:[%s653_s5 + $0x30] sm:$0xff]   ;;  %v462_v14 = vld [vmem:[%s653_s5 + $0x28] sm:$0xff]  }
  0x13   :  { %v463_v15 = vld [vmem:[%s653_s5 + $0x20] sm:$0xff]   ;;  %v464_v16 = vld [vmem:[%s653_s5 + $0x18] sm:$0xff]   ;;  %v465_v17 = vld [vmem:[%s653_s5 + $0x10] sm:$0xff]  }
  0x14   :  { %v353_v18 = vld [vmem:[%s650_s2] ss:$0 sm:$0xff]  ;;  %v466_v26 = vld [vmem:[%s653_s5 + $0x8] sm:$0xff]  }
  0x15   :  { %399 = vmatpush3.bf16.msra.mxu0 %v451_v2  ;;  %407 = vmatpush3.bf16.msra.mxu1 %v453_v4  ;;  %v467_v27 = vld [vmem:[%s653_s5] sm:$0xff]  }
  0x16   :  { %424 = vmatprep.subr.bf16.mxu0 %v515_v0  ;;  %408 = vmatprep.subr.bf16.mxu1 %v515_v0  ;;  %v357_v28 = vld [vmem:[%s652_s4] ss:$0 sm:$0xff]  ;;  %s488_s4 = scalar_lea.vmem %s345_s20, 128 }
  0x17   :  { %v366_v36 = vld [vmem:[%s654_s6] ss:$0 sm:$0xff]  ;;  %p489_p5 = scmp.ne.s32.totalorder %s345_s20, %s488_s4  ;;  %p494_p7 = scmp.lt.s32.totalorder %s488_s4, %s488_s4 }
  0x18   :  { %401 = vmatmul.mubr.msk.bf16.vlgmr.msra.gmra.mxu0 %vm66_vm1, %v42_v5 }
  0x19   :  { %440 = vmatprep.mubr.msk.bf16.mxu0 %vm516_vm0, %v515_v0  ;;  %409 = vmatpush3.bf16.msra.mxu1 %v454_v6  ;;  %p495_p8 = por %p494_p7, %p493_p6 }
  0x1a   :  { %410 = vmatprep.subr.bf16.mxu1 %v515_v0  ;;  %425 = vmatpush3.bf16.msra.mxu0 %v460_v12 }
  0x1b   :  { %426 = vmatprep.subr.bf16.mxu0 %v515_v0  ;;  %p496_p9 = pnand %p495_p8, %p489_p5 }
  0x1d   :  { %411 = vmatpush3.bf16.msra.mxu1 %v455_v7 }
  0x1e   :  { %412 = vmatprep.subr.bf16.mxu1 %v515_v0  ;;  %427 = vmatpush3.bf16.msra.mxu0 %v461_v13 }
  0x1f   :  { %428 = vmatprep.subr.bf16.mxu0 %v515_v0 }
  0x21   :  { %413 = vmatpush3.bf16.msra.mxu1 %v456_v8 }
  0x22   :  { %414 = vmatprep.subr.bf16.mxu1 %v515_v0  ;;  %429 = vmatpush3.bf16.msra.mxu0 %v462_v14 }
  0x23   :  { %430 = vmatprep.subr.bf16.mxu0 %v515_v0 }
  0x25   :  { %415 = vmatpush3.bf16.msra.mxu1 %v457_v9 }
  0x26   :  { %416 = vmatprep.subr.bf16.mxu1 %v515_v0  ;;  %431 = vmatpush3.bf16.msra.mxu0 %v463_v15 }
  0x27   :  { %432 = vmatprep.subr.bf16.mxu0 %v515_v0 }
  0x29   :  { %417 = vmatpush3.bf16.msra.mxu1 %v458_v10 }
  0x2a   :  { %418 = vmatprep.subr.bf16.mxu1 %v515_v0  ;;  %433 = vmatpush3.bf16.msra.mxu0 %v464_v16 }
  0x2b   :  { %434 = vmatprep.subr.bf16.mxu0 %v515_v0 }
  0x2d   :  { %419 = vmatpush3.bf16.msra.mxu1 %v459_v11 }
  0x2e   :  { %435 = vmatpush3.bf16.msra.mxu0 %v465_v17 }
  0x2f   :  { %436 = vmatprep.subr.bf16.mxu0 %v515_v0 }
  0x32   :  { %437 = vmatpush3.bf16.msra.mxu0 %v466_v26 }
  0x33   :  { %438 = vmatprep.subr.bf16.mxu0 %v515_v0 }
  0x36   :  { %439 = vmatpush3.bf16.msra.mxu0 %v467_v27 }
  0xd8   :  { %v104_v19 = vpop.f32.mrf.mxu0 }
  0xd9   :  { %v105_v20 = vadd.f32 %v353_v18, %v104_v19 }
  0xda   :  { %v402_v21 = vpop.f32.mrf.mxu0 }
  0xdb   :  { %v110_v22 = vmax.f32 %v105_v20, 0.0 }
  0xdc   :  { %v107_v23 = vpop.f32.mrf.mxu0 }
  0xdd   :  { %v111_v24 = vpack.c.bf16 %v110_v22, %v110_v22 }
  0xde   :  { %v403_v25 = vpop.f32.mrf.mxu0 }
  0xdf   :  { %421 = vmatmul.mubr.bf16.vlgmr.msra.gmra.mxu1 %v111_v24 }
 0x19f   :  { %v217_v29 = vpop.f32.mrf.mxu1 }
 0x1a0   :  { %v218_v30 = vadd.f32 %v357_v28, %v217_v29 }
 0x1a1   :  { %v422_v31 = vpop.f32.mrf.mxu1 }
 0x1a2   :  { %v223_v32 = vmax.f32 %v218_v30, 0.0 }
 0x1a3   :  { %v220_v33 = vpop.f32.mrf.mxu1 }
 0x1a4   :  { %v224_v34 = vpack.c.bf16 %v223_v32, %v223_v32 }
 0x1a5   :  { %v423_v35 = vpop.f32.mrf.mxu1 }
 0x1a6   :  { %441 = vmatmul.mubr.bf16.vlgmr.msra.gmra.mxu0 %v224_v34 }
 0x266   :  { %v330_v37 = vpop.f32.mrf.mxu0 }
 0x267   :  { %v331_v38 = vadd.f32 %v366_v36, %v330_v37 }
 0x268   :  { %v442_v39 = vpop.f32.mrf.mxu0 }
 0x269   :  { %337 = vst.msk [vmem:[#allocation5] sm:$0xff] %vm336_vm2, %v331_v38 }
 0x26a   :  { %v333_v40 = vpop.f32.mrf.mxu0 }
 0x26b   :  { %499 = shalt.err (!%p496_p9)
}
 0x26c   :  { %347 = dma.vmem_to_hbm [thread:$0]  %s345_s20, 128, %s655_s7, [#allocation4]   ;;  %v443_v41 = vpop.f32.mrf.mxu0 }
 0x26d   :  { %510 = dma.done.wait [#allocation4], 128  }
 0x26e   :  { %511 = vsyncadd [#allocation4], 4294967168 }
 0x26f   :  { %351 = vsyncpa [#allocation3], 1 }
 0x270   :  { %352 = vsyncpa [#allocation4], 1 }

</bundles_post_ra>
